<compile_context>
chip_gen: v6e
topology: v6e:2x2x1
jax: 0.10.0
libtpu: 0.0.40
codegen_flags: <defaults>
</compile_context>

<pallas_src>
import math

import numpy as np
import jax
import jax.numpy as jnp
from jax.experimental import pallas as pl
from jax.experimental.pallas import tpu as pltpu


# ----------------------------- parameter setup (plain JAX/numpy glue) --------

def dct_mat(size: int) -> np.ndarray:
    m = [[(math.sqrt(1.0 / size) if i == 0 else math.sqrt(2.0 / size))
          * math.cos((j + 0.5) * math.pi * i / size)
          for j in range(size)] for i in range(size)]
    return np.asarray(m, dtype=np.float32)


def generate_filter(start: int, end: int, size: int) -> np.ndarray:
    return np.asarray(
        [[0.0 if (i + j > end or i + j <= start) else 1.0 for j in range(size)]
         for i in range(size)],
        dtype=np.float32,
    )


def norm_sigma(x):
    return 2.0 * jax.nn.sigmoid(x) - 1.0


def make_fad_params(size: int, key):
    """Deterministic synthetic parameters matching FAD_Head.__init__ shapes."""
    d = jnp.asarray(dct_mat(size))                      # (S, S)
    d_t = d.T                                           # (S, S)

    bands = [(0, size // 50), (size // 50, size // 10),
             (size // 10, size), (0, size * 2)]
    bases = [jnp.asarray(generate_filter(s, e, size)) for (s, e) in bands]

    keys = jax.random.split(key, 4)
    learnables = [0.1 * jax.random.normal(k, (size, size), dtype=jnp.float32)
                  for k in keys]
    # use_learnable=True, norm=False for every Filter in FAD_Head
    filts = jnp.stack([b + norm_sigma(l) for b, l in zip(bases, learnables)])  # (4, S, S)

    ks = jnp.full((4,), 0.25, dtype=jnp.float32)        # k1..k4 = 0.25
    return d, d_t, filts, ks


def prepare_fad_constants(d, d_t, filts, ks, c):
    """Build all kernel constants ONCE (hoisted out of the forward path).

    Every operator is (at most) (C*S, 4*S) / (C*S, C*S) -- no kron over the
    (band, channel) product, so this scales to realistic F3Net sizes and fits
    v7x's smaller VMEM.
    """
    s = d.shape[0]
    # Fold k_i into each band filter (exact: k is a scalar factor of y_i).
    filts_eff = filts * ks[:, None, None]                                   # (4, S, S)
    # Band blocks stacked along lanes, tiled across channels along rows:
    # filt_cols[c*S + i, b*S + j] = k_b * filt_b[i, j]
    filt_cols = jnp.tile(
        jnp.concatenate([filts_eff[b] for b in range(4)], axis=1), (c, 1))  # (C*S, 4*S)

    eye_c = jnp.eye(c, dtype=d.dtype)
    consts = {
        "bdl_d": jnp.kron(eye_c, d),                     # (C*S, C*S) fwd left op
        "dct_t_rep": jnp.tile(d_t, (1, 4)),              # (S, 4*S)   fwd right op, lane-replicated
        "filt_cols": filt_cols,                          # (C*S, 4*S) k-folded band filters
        "bdl_dt": jnp.kron(eye_c, d_t),                  # (C*S, C*S) inv left op
        "bdr_d4": jnp.kron(jnp.eye(4, dtype=d.dtype), d),  # (4*S, 4*S) inv right op
    }
    return consts


# ----------------------------- Pallas kernel ---------------------------------

def fad_kernel(bdl_d_ref, dct_t_rep_ref, filt_ref, bdl_dt_ref, bdr_d_ref,
               x_ref, o_ref):
    """One grid step = `bb` samples; all C channels and all 4 bands at once."""
    bb = x_ref.shape[0]
    for b in range(bb):                       # static unroll over fused samples
        x = x_ref[b]                                                        # (C*S, S), rows=(c, row)

        # Forward 2-D DCT of every channel:
        #   kron(I_C, D) @ x  does every per-channel left multiply at once;
        #   the right multiply uses [D^T D^T D^T D^T] so the result already
        #   carries the 4 band copies along lanes (lane width 4*S).
        f1 = jnp.dot(bdl_d_ref[...], x, preferred_element_type=jnp.float32)           # (C*S, S)
        x_freq4 = jnp.dot(f1, dct_t_rep_ref[...], preferred_element_type=jnp.float32)  # (C*S, 4*S)

        # All 4 band filters (k_i folded in) in one lane-dense elementwise op.
        x_pass = x_freq4 * filt_ref[...]                                              # (C*S, 4*S)

        # Inverse 2-D DCT: block-diagonal left op over channels (rows), then
        # block-diagonal right op over bands (lane column blocks).
        g = jnp.dot(bdl_dt_ref[...], x_pass, preferred_element_type=jnp.float32)      # (C*S, 4*S)
        y = jnp.dot(g, bdr_d_ref[...], preferred_element_type=jnp.float32)            # (C*S, 4*S)

        o_ref[b] = y.astype(o_ref.dtype)      # one contiguous lane-dense store


def fad_head_forward(x, consts, samples_per_step=None):
    """x: (N, C, S, S) f32 -> (N, 4*C, S, S) f32 (== FAD_Head.forward)."""
    n, c, s, _ = x.shape
    cs = c * s
    fs = 4 * s

    # Fuse samples per grid step to amortize the ~0.35us/step overhead on the
    # single-TC v5e/v6e, but keep >= 2 "parallel" steps for v7x's two TCs.
    if samples_per_step is None:
        samples_per_step = n // 2 if (n >= 2 and n % 2 == 0) else 1
    bb = samples_per_step
    assert n % bb == 0, "samples_per_step must divide the batch"

    x_rows = x.reshape(n, cs, s)              # free reshape, rows = (channel, row)

    # Honest cost hint for the restructured kernel.
    flops = 2 * n * (cs * cs * s + cs * s * fs + cs * cs * fs + cs * fs * fs)
    bytes_accessed = 4 * (n * cs * s                       # x
                          + n * cs * fs                    # out
                          + 2 * cs * cs + s * fs + cs * fs + fs * fs)  # constants

    # NOTE: the constant operands are re-fetched every step with the default
    # 2-deep buffering; at S=16 that is ~130 KiB of VMEM total.  At realistic
    # F3Net sizes, single-buffer them via pipeline_mode=pl.Buffered(1).
    out = pl.pallas_call(
        fad_kernel,
        out_shape=jax.ShapeDtypeStruct((n, cs, fs), jnp.float32),
        grid_spec=pltpu.PrefetchScalarGridSpec(
            num_scalar_prefetch=0,
            grid=(n // bb,),
            in_specs=[
                pl.BlockSpec((cs, cs), lambda i: (0, 0)),        # kron(I_C, D)
                pl.BlockSpec((s, fs), lambda i: (0, 0)),         # [D^T]*4 (lane-replicated)
                pl.BlockSpec((cs, fs), lambda i: (0, 0)),        # k-folded band filters
                pl.BlockSpec((cs, cs), lambda i: (0, 0)),        # kron(I_C, D^T)
                pl.BlockSpec((fs, fs), lambda i: (0, 0)),        # kron(I_4, D)
                pl.BlockSpec((bb, cs, s), lambda i: (i, 0, 0)),  # x, bb samples / step
            ],
            out_specs=pl.BlockSpec((bb, cs, fs), lambda i: (i, 0, 0)),
        ),
        compiler_params=pltpu.CompilerParams(
            dimension_semantics=("parallel",)),
        cost_estimate=pl.CostEstimate(
            flops=flops, transcendentals=0, bytes_accessed=bytes_accessed),
    )(consts["bdl_d"], consts["dct_t_rep"], consts["filt_cols"],
      consts["bdl_dt"], consts["bdr_d4"], x_rows)

    # (N, C*S, 4*S) -> (N, 4*C, S, S): one small transpose in the wrapper
    # (bands were carried along lanes for lane density inside the kernel).
    return (out.reshape(n, c, s, 4, s)
               .transpose(0, 3, 1, 2, 4)
               .reshape(n, 4 * c, s, s))


# ----------------------------- reference (plain JAX) --------------------------

def fad_head_reference(x, d, d_t, filts, ks):
    x_freq = jnp.einsum('ij,ncjk,kl->ncil', d, x, d_t)
    ys = []
    for i in range(4):
        xp = x_freq * filts[i]
        y = jnp.einsum('ij,ncjk,kl->ncil', d_t, xp, d) * ks[i]
        ys.append(y)
    return jnp.concatenate(ys, axis=1)


# ----------------------------- main -------------------------------------------

if __name__ == "__main__":
    key = jax.random.PRNGKey(0)
    k_x, k_params = jax.random.split(key)

    N, C, S = 2, 4, 16
    x = jax.random.normal(k_x, (N, C, S, S), dtype=jnp.float32)

    d, d_t, filts, ks = make_fad_params(S, k_params)
    consts = prepare_fad_constants(d, d_t, filts, ks, C)   # hoisted: built once

    out = fad_head_forward(x, consts)
    out = jax.block_until_ready(out)

    ref = fad_head_reference(x, d, d_t, filts, ks)
    assert out.shape == (N, 4 * C, S, S), out.shape
    assert jnp.allclose(out, ref, atol=1e-4, rtol=1e-4), "mismatch vs reference"

    print("KERNEL_OK")
</pallas_src>

<mosaic_0001>
module attributes {stable_mosaic.version = 11 : i64} {
  func.func @fad_kernel(%arg0: i32, %arg1: memref<64x64xf32, #tpu.memory_space<vmem>>, %arg2: memref<16x64xf32, #tpu.memory_space<vmem>>, %arg3: memref<64x64xf32, #tpu.memory_space<vmem>>, %arg4: memref<64x64xf32, #tpu.memory_space<vmem>>, %arg5: memref<64x64xf32, #tpu.memory_space<vmem>>, %arg6: memref<1x64x16xf32, #tpu.memory_space<vmem>>, %arg7: memref<1x64x64xf32, #tpu.memory_space<vmem>>) attributes {dimension_semantics = [#tpu.dimension_semantics<parallel>], iteration_bounds = array<i64: 2>, scalar_prefetch = 0 : i64, scratch_operands = 0 : i64, tpu.core_type = #tpu.core_type<tc>, window_params = [{pipeline_mode = #tpu.pipeline_mode<synchronous>, transform_indices = @transform_0, window_bounds = array<i64: 64, 64>}, {pipeline_mode = #tpu.pipeline_mode<synchronous>, transform_indices = @transform_1, window_bounds = array<i64: 16, 64>}, {pipeline_mode = #tpu.pipeline_mode<synchronous>, transform_indices = @transform_2, window_bounds = array<i64: 64, 64>}, {pipeline_mode = #tpu.pipeline_mode<synchronous>, transform_indices = @transform_3, window_bounds = array<i64: 64, 64>}, {pipeline_mode = #tpu.pipeline_mode<synchronous>, transform_indices = @transform_4, window_bounds = array<i64: 64, 64>}, {transform_indices = @transform_5, window_bounds = array<i64: 1, 64, 16>}, {transform_indices = @transform_6, window_bounds = array<i64: 1, 64, 64>}]} {
    %c0 = arith.constant 0 : index
    %c0_0 = arith.constant 0 : index
    %c0_1 = arith.constant 0 : index
    %0 = vector.load %arg6[%c0, %c0_0, %c0_1] : memref<1x64x16xf32, #tpu.memory_space<vmem>>, vector<1x64x16xf32>
    %1 = vector.shape_cast %0 : vector<1x64x16xf32> to vector<64x16xf32>
    %c0_2 = arith.constant 0 : index
    %c0_3 = arith.constant 0 : index
    %2 = vector.load %arg1[%c0_2, %c0_3] : memref<64x64xf32, #tpu.memory_space<vmem>>, vector<64x64xf32>
    %cst = arith.constant dense<0.000000e+00> : vector<64x16xf32>
    %3 = tpu.matmul %2, %1, %cst {dimension_numbers = #tpu.dot_dimension_numbers<[1], [0], [0], [1], [0, 0, 1, 1], [], []>} : vector<64x64xf32>, vector<64x16xf32>, vector<64x16xf32> -> vector<64x16xf32>
    %c0_4 = arith.constant 0 : index
    %c0_5 = arith.constant 0 : index
    %4 = vector.load %arg2[%c0_4, %c0_5] : memref<16x64xf32, #tpu.memory_space<vmem>>, vector<16x64xf32>
    %cst_6 = arith.constant dense<0.000000e+00> : vector<64x64xf32>
    %5 = tpu.matmul %3, %4, %cst_6 {dimension_numbers = #tpu.dot_dimension_numbers<[1], [0], [0], [1], [0, 0, 1, 1], [], []>} : vector<64x16xf32>, vector<16x64xf32>, vector<64x64xf32> -> vector<64x64xf32>
    %c0_7 = arith.constant 0 : index
    %c0_8 = arith.constant 0 : index
    %6 = vector.load %arg3[%c0_7, %c0_8] : memref<64x64xf32, #tpu.memory_space<vmem>>, vector<64x64xf32>
    %7 = arith.mulf %5, %6 : vector<64x64xf32>
    %c0_9 = arith.constant 0 : index
    %c0_10 = arith.constant 0 : index
    %8 = vector.load %arg4[%c0_9, %c0_10] : memref<64x64xf32, #tpu.memory_space<vmem>>, vector<64x64xf32>
    %cst_11 = arith.constant dense<0.000000e+00> : vector<64x64xf32>
    %9 = tpu.matmul %8, %7, %cst_11 {dimension_numbers = #tpu.dot_dimension_numbers<[1], [0], [0], [1], [0, 0, 1, 1], [], []>} : vector<64x64xf32>, vector<64x64xf32>, vector<64x64xf32> -> vector<64x64xf32>
    %c0_12 = arith.constant 0 : index
    %c0_13 = arith.constant 0 : index
    %10 = vector.load %arg5[%c0_12, %c0_13] : memref<64x64xf32, #tpu.memory_space<vmem>>, vector<64x64xf32>
    %cst_14 = arith.constant dense<0.000000e+00> : vector<64x64xf32>
    %11 = tpu.matmul %9, %10, %cst_14 {dimension_numbers = #tpu.dot_dimension_numbers<[1], [0], [0], [1], [0, 0, 1, 1], [], []>} : vector<64x64xf32>, vector<64x64xf32>, vector<64x64xf32> -> vector<64x64xf32>
    %c0_15 = arith.constant 0 : index
    %c0_16 = arith.constant 0 : index
    %c0_17 = arith.constant 0 : index
    %12 = vector.load %arg7[%c0_15, %c0_16, %c0_17] : memref<1x64x64xf32, #tpu.memory_space<vmem>>, vector<1x64x64xf32>
    %13 = vector.shape_cast %12 : vector<1x64x64xf32> to vector<64x64xf32>
    %14 = vector.shape_cast %11 : vector<64x64xf32> to vector<1x64x64xf32>
    tpu.vector_store %arg7[%c0_15, %c0_16, %c0_17], %14 {strides = array<i32>} : memref<1x64x64xf32, #tpu.memory_space<vmem>>, vector<1x64x64xf32>,
    return
  }
  func.func @transform_0(%arg0: i32) -> (i32, i32) {
    %c0_i32 = arith.constant 0 : i32
    %c0_i32_0 = arith.constant 0 : i32
    %c0_i32_1 = arith.constant 0 : i32
    return %c0_i32, %c0_i32_0 : i32, i32
  }
  func.func @transform_1(%arg0: i32) -> (i32, i32) {
    %c0_i32 = arith.constant 0 : i32
    %c0_i32_0 = arith.constant 0 : i32
    %c0_i32_1 = arith.constant 0 : i32
    return %c0_i32, %c0_i32_0 : i32, i32
  }
  func.func @transform_2(%arg0: i32) -> (i32, i32) {
    %c0_i32 = arith.constant 0 : i32
    %c0_i32_0 = arith.constant 0 : i32
    %c0_i32_1 = arith.constant 0 : i32
    return %c0_i32, %c0_i32_0 : i32, i32
  }
  func.func @transform_3(%arg0: i32) -> (i32, i32) {
    %c0_i32 = arith.constant 0 : i32
    %c0_i32_0 = arith.constant 0 : i32
    %c0_i32_1 = arith.constant 0 : i32
    return %c0_i32, %c0_i32_0 : i32, i32
  }
  func.func @transform_4(%arg0: i32) -> (i32, i32) {
    %c0_i32 = arith.constant 0 : i32
    %c0_i32_0 = arith.constant 0 : i32
    %c0_i32_1 = arith.constant 0 : i32
    return %c0_i32, %c0_i32_0 : i32, i32
  }
  func.func @transform_5(%arg0: i32) -> (i32, i32, i32) {
    %c0_i32 = arith.constant 0 : i32
    %c0_i32_0 = arith.constant 0 : i32
    %c0_i32_1 = arith.constant 0 : i32
    return %arg0, %c0_i32, %c0_i32_0 : i32, i32, i32
  }
  func.func @transform_6(%arg0: i32) -> (i32, i32, i32) {
    %c0_i32 = arith.constant 0 : i32
    %c0_i32_0 = arith.constant 0 : i32
    %c0_i32_1 = arith.constant 0 : i32
    return %arg0, %c0_i32, %c0_i32_0 : i32, i32, i32
  }
}

</mosaic_0001>

<bundles_post_ra>
// kernel: tpu_custom_call.1
= control target key start
LH: loop header
LB: loop body
LE: loop exit
PB: predicated region body
PF: predicated region fallthrough
CT: control target
= control target key end

     0   :  { %11 = vsyncpa [#allocation3], 0  ;;  %s1671_s0 = inlined_call_operand.vmem [shape: f32[64,64], index: 0, kind: input, shape index: {}]   ;;  %s1672_s1 = inlined_call_operand.vmem [shape: f32[16,64], index: 1, kind: input, shape index: {}]   ;;  %s1673_s2 = inlined_call_operand.vmem [shape: f32[64,64], index: 2, kind: input, shape index: {}]   ;;  %s1674_s3 = inlined_call_operand.hbm [shape: f32[64,64], index: 3, kind: input, shape index: {}]   ;;  %s1675_s4 = inlined_call_operand.hbm [shape: f32[64,64], index: 4, kind: input, shape index: {}]   ;;  %s1676_s5 = inlined_call_operand.vmem [shape: f32[2,64,16], index: 5, kind: input, shape index: {}]   ;;  %s1677_s6 = inlined_call_operand.hbm [shape: f32[2,64,64], index: 6, kind: output, shape index: {}]  }
   0x1   :  { %12 = vsyncpa [#allocation6], 0 }
   0x2   :  { %13 = vsyncpa [#allocation4], 0 }
   0x3   :  { %15 = vsyncpa [#allocation4 + $0x1], 0  ;;  %s1406_s21 = smov 0   ;;  %s1408_s22 = smov 0  }
   0x4   :  { %s1410_s23 = smov 0   ;;  %s1412_s24 = smov 0  }
   0x5 LB: > { %s1427_s25 = sadd.s32 4294967295, %s1362_s24   ;;  %s954_s26 = sadd.s32 4294967294, %s1362_s24   ;;  %s1362_s24 = sphi %s1412_s24, %s1691_s24   ;;  %s1358_s23 = sphi %s1410_s23, %s1690_s23   ;;  %s1354_s22 = sphi %s1408_s22, %s1689_s22   ;;  %s1350_s21 = sphi %s1406_s21, %s1688_s21  }
   0x6   : > { %s1431_s27 = sadd.s32 1, %s1362_s24   ;;  %s159_s28 = sadd.s32 1, %s1358_s23 }
   0x7   : > { %s156_s29 = ssub.s32 %s1362_s24, %s1431_s27  ;;  %p169_p0 = scmp.ne.s32.totalorder %s1358_s23, %s1354_s22 }
   0x8   : > { %p157_p1 = scmp.eq.s32.totalorder %s156_s29, 0  ;;  %p170_p2 = scmp.eq.s32.totalorder %s1427_s25, 1 }
   0x9   : > { %p175_p3 = scmp.ne.s32.totalorder %s1354_s22, %s1350_s21  ;;  %p176_p4 = scmp.eq.s32.totalorder %s954_s26, 1 }
   0xa   : > { %s1442_s30 = scalar_select %p157_p1, %s1358_s23, %s159_s28  }
   0xb   : > { %p1444_p5 = por %p170_p2, %p169_p0  ;;  %p1448_p6 = por %p176_p4, %p175_p3 }
   0xc   : > { %p955_p7 = scmp.ge.s32.totalorder %s1362_s24, 1  ;;  %p183_p8 = scmp.lt.s32.totalorder %s1362_s24, 3 }
   0xd   : > { %s1680_s8 = scalar_select %p1448_p6, 1, 0 }
   0xe   : > { %p1678_p9 = scmp.eq.s32.totalorder %s1427_s25, 0  ;;  %p1455_p10 = pnand %p955_p7, %p183_p8 }
   0xf   : > { %s1364_s10 = smov [#allocation2]   ;;  %s1365_s13 = smov [#allocation5]  }
  0x10   : > { %s204_s11 = sshll.u32 %s1364_s10, 4  ;;  %p1188_p11 = pneg %p1455_p10  ;;  %s205_s11 = int_to_ptr.vmem [resolvable:$true] %s204_s11 }
  0x11   : > { %s217_s14 = sshll.u32 %s1365_s13, 4  ;;  %s1253_s15 = scalar_lea.vmem %s205_s11, 1024  ;;  %s218_s14 = int_to_ptr.vmem [resolvable:$true] %s217_s14 }
  0x12   : > { %p1463_p12 = pnand %p1678_p9, %p1188_p11  ;;  %p1254_p0 = scmp.ne.s32.totalorder %s205_s11, %s1253_s15 }
  0x13   : > { %p1261_p3 = scmp.lt.s32.totalorder %s205_s11, %s205_s11  ;;  %p1262_p4 = scmp.lt.s32.totalorder %s1253_s15, %s1253_s15 }
  0x14   : > { %p1244_p13 = pneg %p1463_p12 }
  0x15   : > { %p1263_p7 = por %p1262_p4, %p1261_p3 }
  0x16   : > { %p1256_p1 = pnand %p1254_p0, %p1244_p13 }
  0x18   : > { %p1257_p2 = pneg %p1256_p1 }
  0x1a   : > { %p1264_p8 = pnand %p1263_p7, %p1257_p2 }
  0x1c   : > { %1267 = shalt.err (!%p1264_p8)
}
  0x1d   : > { %s1366_s16 = smov 128   ;;  %s1367_s17 = smov 8  }
  0x1e   : > { %1191 = dma.hbm_to_vmem [thread:$0]  (!%p1463_p12), %s1674_s3, 1024, %s205_s11, [#allocation3], %s1366_s16, %s1366_s16, %s1367_s17  }
  0x1f   : > { %s1279_s20 = scalar_lea.vmem %s218_s14, 1024  ;;  %p1287_p9 = scmp.lt.s32.totalorder %s218_s14, %s218_s14 }
  0x20   : > { %p1280_p11 = scmp.ne.s32.totalorder %s218_s14, %s1279_s20  ;;  %p1288_p6 = scmp.lt.s32.totalorder %s1279_s20, %s1279_s20 }
  0x22   : > { %p1282_p0 = pnand %p1280_p11, %p1244_p13  ;;  %p1289_p3 = por %p1288_p6, %p1287_p9 }
  0x24   : > { %p1283_p1 = pneg %p1282_p0 }
  0x26   : > { %p1290_p2 = pnand %p1289_p3, %p1283_p1 }
  0x28   : > { %1293 = shalt.err (!%p1290_p2)
}
  0x29   : > { %1194 = dma.hbm_to_vmem [thread:$0]  (!%p1463_p12), %s1675_s4, 1024, %s218_s14, [#allocation6], %s1366_s16, %s1366_s16, %s1367_s17  }
  0x2a   : > { %241 = sbr.rel (%p1455_p10) target bundleno = 910 (0x38e), region = 44  ;;  %p1683_p4 = scmp.eq.s32.totalorder (!%p1455_p10), %s1427_s25, 0 }
  0x2f   : > { %1337 = dma.done.wait (%p1683_p4), [#allocation3], 1024   ;;  %p1684_p13 = pmov %p1683_p4 }
  0x30   : > { %p1685_p7 = pmov %p1683_p4 }
  0x31   : > { %1339 = vsyncadd (%p1684_p13), [#allocation3], 4294966272 }
  0x32   : > { %1341 = dma.done.wait (%p1685_p7), [#allocation6], 1024   ;;  %p1686_p6 = pmov %p1683_p4 }
  0x33   : > { %p275_p9 = scmp.lt.s32.totalorder %s1427_s25, 1  ;;  %vm296_vm0 = vcmask 523264   ;;  %v288_v3 = vld [vmem:[%s1671_s0] sm:$0xff]  ;;  %v289_v9 = vld [vmem:[%s1671_s0 + $0x8] sm:$0xff]  ;;  %v290_v10 = vld [vmem:[%s1671_s0 + $0x10] sm:$0xff]  ;;  %vm428_vm1 = vcmask 130048  }
  0x34   : > { %1343 = vsyncadd (%p1686_p6), [#allocation6], 4294966272  ;;  %1078 = vmatprep.mubr.msk.f32.mxu0 %vm296_vm0, %v288_v3  ;;  %v291_v11 = vld [vmem:[%s1671_s0 + $0x18] sm:$0xff]  ;;  %v292_v12 = vld [vmem:[%s1671_s0 + $0x20] sm:$0xff]  ;;  %s272_s19 = sand.u32 1, %s1354_s22   ;;  %s1368_s13 = smov [#allocation7]  }
  0x35   : > { %s276_s29 = scalar_select %p275_p9, %s1427_s25, 1  ;;  %v293_v13 = vld [vmem:[%s1671_s0 + $0x28] sm:$0xff]  ;;  %v294_v14 = vld [vmem:[%s1671_s0 + $0x30] sm:$0xff]  ;;  %v295_v15 = vld [vmem:[%s1671_s0 + $0x38] sm:$0xff] }
  0x36   : > { %v427_v16 = vld [vmem:[%s1672_s1 + $0x8] sm:$0xff]  ;;  %v426_v17 = vld [vmem:[%s1672_s1] sm:$0xff]  ;;  %v1539_v27 = vld [vmem:[#allocation5 + $0x38] sm:$0xff]  ;;  %s962_s20 = sshll.u32 %s272_s19, 6  ;;  %s1298_s14 = sshll.u32 %s1368_s13, 4  ;;  %s1299_s14 = int_to_ptr.vmem [resolvable:$false] %s1298_s14 }
  0x37   : > { %s1002_s10 = sshll.u32 %s276_s29, 6  ;;  %1090 = vmatprep.subr.mxu1 %v427_v16  ;;  %v574_v26 = vld [vmem:[#allocation2] sm:$0xff]  ;;  %v1541_v28 = vld [vmem:[#allocation5 + $0x30] sm:$0xff]  ;;  %v1545_v29 = vld [vmem:[#allocation5 + $0x28] sm:$0xff]  ;;  %s274_s26 = scalar_lea.vmem [#allocation7], %s962_s20 }
  0x38   : > { %s279_s12 = scalar_lea.vmem %s1676_s5, %s1002_s10  ;;  %1091 = vmatpush3.msra.mxu1 %v427_v16  ;;  %v1549_v30 = vld [vmem:[#allocation5 + $0x20] sm:$0xff]  ;;  %v1553_v31 = vld [vmem:[#allocation5 + $0x18] sm:$0xff]  ;;  %v1557_v32 = vld [vmem:[#allocation5 + $0x10] sm:$0xff]  ;;  %s870_s28 = sshll.u32 %s274_s26, 4  ;;  %s1622_s28 = int_to_ptr.vmem [resolvable:$true] %s870_s28 }
  0x39   : > { %v287_v0 = vld [vmem:[%s279_s12 + $0x38] sm:$0xff]  ;;  %v286_v1 = vld [vmem:[%s279_s12 + $0x30] sm:$0xff]  ;;  %v285_v2 = vld [vmem:[%s279_s12 + $0x28] sm:$0xff]  ;;  %1092 = vmatprep.subr.mxu1 %v426_v17  ;;  %s1003_s29 = sshll.u32 %s1427_s25, 10  ;;  %s1631_s25 = scalar_lea.sflag [#allocation4], %s272_s19 }
  0x3a   : > { %1062 = vmatprep.subr.mxu0 %v287_v0  ;;  %v284_v4 = vld [vmem:[%s279_s12 + $0x20] sm:$0xff]  ;;  %v283_v5 = vld [vmem:[%s279_s12 + $0x18] sm:$0xff]  ;;  %v282_v6 = vld [vmem:[%s279_s12 + $0x10] sm:$0xff]  ;;  %1093 = vmatpush3.msra.mxu1 %v426_v17  ;;  %s1627_s9 = scalar_lea.hbm %s1677_s6, %s1003_s29  ;;  %s1300_s15 = scalar_lea.vmem %s1299_s14, 2048 }
  0x3b   : > { %1063 = vmatpush3.msra.mxu0 %v287_v0  ;;  %v281_v7 = vld [vmem:[%s279_s12 + $0x8] sm:$0xff]  ;;  %v280_v8 = vld [vmem:[%s279_s12] sm:$0xff]  ;;  %v565_v39 = vld [vmem:[%s1673_s2 + $0x38] sm:$0xff]  ;;  %s1294_s12 = scalar_lea.vmem %s1622_s28, 1024  ;;  %p1301_p11 = scmp.lt.s32.totalorder %s1622_s28, %s1299_s14 }
  0x3c   : > { %1064 = vmatprep.subr.mxu0 %v286_v1  ;;  %v564_v41 = vld [vmem:[%s1673_s2 + $0x30] sm:$0xff]  ;;  %v563_v43 = vld [vmem:[%s1673_s2 + $0x28] sm:$0xff]  ;;  %v562_v46 = vld [vmem:[%s1673_s2 + $0x20] sm:$0xff]  ;;  %p1295_p10 = scmp.ne.s32.totalorder %s1622_s28, %s1294_s12  ;;  %p1302_p0 = scmp.lt.s32.totalorder %s1300_s15, %s1294_s12 }
  0x3d   : > { %1065 = vmatpush3.msra.mxu0 %v286_v1  ;;  %v561_v48 = vld [vmem:[%s1673_s2 + $0x18] sm:$0xff]  ;;  %v560_v50 = vld [vmem:[%s1673_s2 + $0x10] sm:$0xff]  ;;  %v559_v52 = vld [vmem:[%s1673_s2 + $0x8] sm:$0xff] }
  0x3e   : > { %1066 = vmatprep.subr.mxu0 %v285_v2  ;;  %v558_v54 = vld [vmem:[%s1673_s2] sm:$0xff]  ;;  %v575_v57 = vld [vmem:[#allocation2 + $0x8] sm:$0xff]  ;;  %v576_v58 = vld [vmem:[#allocation2 + $0x10] sm:$0xff]  ;;  %p1296_p12 = pnand %p1295_p10, %p1444_p5  ;;  %p1303_p1 = por %p1302_p0, %p1301_p11 }
  0x3f   : > { %1067 = vmatpush3.msra.mxu0 %v285_v2  ;;  %v577_v59 = vld [vmem:[#allocation2 + $0x18] sm:$0xff]  ;;  %v578_v60 = vld [vmem:[#allocation2 + $0x20] sm:$0xff]  ;;  %v579_v61 = vld [vmem:[#allocation2 + $0x28] sm:$0xff] }
  0x40   : > { %1068 = vmatprep.subr.mxu0 %v284_v4  ;;  %v580_v62 = vld [vmem:[#allocation2 + $0x30] sm:$0xff]  ;;  %v581_v63 = vld [vmem:[#allocation2 + $0x38] sm:$0xff]  ;;  %v712_v0 = vld [vmem:[#allocation5 + $0x8] sm:$0xff]  ;;  %p1297_p8 = pneg %p1296_p12 }
  0x41   : > { %1069 = vmatpush3.msra.mxu0 %v284_v4  ;;  %v711_v1 = vld [vmem:[#allocation5] sm:$0xff] }
  0x42   : > { %1070 = vmatprep.subr.mxu0 %v283_v5  ;;  %p1304_p3 = pnand %p1303_p1, %p1297_p8 }
  0x43   : > { %1071 = vmatpush3.msra.mxu0 %v283_v5 }
  0x44   : > { %1072 = vmatprep.subr.mxu0 %v282_v6 }
  0x45   : > { %1073 = vmatpush3.msra.mxu0 %v282_v6 }
  0x46   : > { %1074 = vmatprep.subr.mxu0 %v281_v7 }
  0x47   : > { %1075 = vmatpush3.msra.mxu0 %v281_v7 }
  0x48   : > { %1076 = vmatprep.subr.mxu0 %v280_v8 }
  0x49   : > { %1077 = vmatpush3.msra.mxu0 %v280_v8 }
  0x4a   : > { %1079 = vmatmul.mubr.msk.f32.vlgmr.msra.gmra.mxu0 %vm296_vm0, %v289_v9  ;;  %1134 = vmatprep.subr.mxu0 %v1539_v27 }
  0x4b   : > { %1081 = vmatprep.mubr.msk.f32.mxu0 %vm296_vm0, %v290_v10  ;;  %1135 = vmatpush3.msra.mxu0 %v1539_v27 }
  0x4c   : > { %1136 = vmatprep.subr.mxu0 %v1541_v28 }
  0x4d   : > { %1137 = vmatpush3.msra.mxu0 %v1541_v28 }
  0x4e   : > { %1082 = vmatmul.mubr.msk.f32.gmra.mxu0 %vm296_vm0, %v291_v11  ;;  %1138 = vmatprep.subr.mxu0 %v1545_v29 }
  0x4f   : > { %1084 = vmatprep.mubr.msk.f32.mxu0 %vm296_vm0, %v292_v12  ;;  %1139 = vmatpush3.msra.mxu0 %v1545_v29 }
  0x50   : > { %1140 = vmatprep.subr.mxu0 %v1549_v30 }
  0x51   : > { %1141 = vmatpush3.msra.mxu0 %v1549_v30 }
  0x52   : > { %1085 = vmatmul.mubr.msk.f32.gmra.mxu0 %vm296_vm0, %v293_v13  ;;  %1142 = vmatprep.subr.mxu0 %v1553_v31 }
  0x53   : > { %1087 = vmatprep.mubr.msk.f32.mxu0 %vm296_vm0, %v294_v14  ;;  %1143 = vmatpush3.msra.mxu0 %v1553_v31 }
  0x54   : > { %1144 = vmatprep.subr.mxu0 %v1557_v32 }
  0x55   : > { %1145 = vmatpush3.msra.mxu0 %v1557_v32 }
  0x56   : > { %1088 = vmatmul.mubr.msk.f32.gmra.mxu0 %vm296_vm0, %v295_v15  ;;  %1146 = vmatprep.subr.mxu0 %v712_v0 }
  0x57   : > { %1147 = vmatpush3.msra.mxu0 %v712_v0 }
  0x58   : > { %1148 = vmatprep.subr.mxu0 %v711_v1 }
  0x59   : > { %1149 = vmatpush3.msra.mxu0 %v711_v1 }
 0x10a   : > { %v1080_v18 = vpop.f32.mrf.mxu0 }
 0x10c   : > { %v387_v19 = vpop.f32.mrf.mxu0 }
 0x10d   : > { %1094 = vmatprep.mubr.msk.f32.mxu1 %vm428_vm1, %v387_v19 }
 0x10e   : > { %v1083_v20 = vpop.f32.mrf.mxu0  ;;  %1095 = vmatmul.mubr.msk.f32.vlgmr.msra.gmra.mxu1 %vm428_vm1, %v1080_v18 }
 0x110   : > { %v397_v21 = vpop.f32.mrf.mxu0 }
 0x111   : > { %1097 = vmatprep.mubr.msk.f32.mxu1 %vm428_vm1, %v397_v21 }
 0x112   : > { %v1086_v22 = vpop.f32.mrf.mxu0  ;;  %1098 = vmatmul.mubr.msk.f32.gmra.mxu1 %vm428_vm1, %v1083_v20 }
 0x114   : > { %v407_v23 = vpop.f32.mrf.mxu0 }
 0x115   : > { %1100 = vmatprep.mubr.msk.f32.mxu1 %vm428_vm1, %v407_v23 }
 0x116   : > { %v1089_v24 = vpop.f32.mrf.mxu0  ;;  %1101 = vmatmul.mubr.msk.f32.gmra.mxu1 %vm428_vm1, %v1086_v22 }
 0x118   : > { %v417_v25 = vpop.f32.mrf.mxu0 }
 0x119   : > { %1103 = vmatprep.mubr.msk.f32.mxu1 %vm428_vm1, %v417_v25 }
 0x11a   : > { %1104 = vmatmul.mubr.msk.f32.gmra.mxu1 %vm428_vm1, %v1089_v24 }
 0x11b   : > { %1122 = vmatprep.mubr.msk.f32.mxu1 %vm296_vm0, %v574_v26 }
 0x1ce   : > { %v1096_v33 = vpop.f32.mrf.mxu1 }
 0x1cf   : > { %v567_v55 = vmul.f32 %v1096_v33, %v559_v52 }
 0x1d0   : > { %v519_v34 = vpop.f32.mrf.mxu1 }
 0x1d1   : > { %v566_v56 = vmul.f32 %v558_v54, %v519_v34 }
 0x1d2   : > { %v1099_v35 = vpop.f32.mrf.mxu1 }
 0x1d3   : > { %v569_v51 = vmul.f32 %v1099_v35, %v561_v48 }
 0x1d4   : > { %v529_v36 = vpop.f32.mrf.mxu1 }
 0x1d5   : > { %v568_v53 = vmul.f32 %v560_v50, %v529_v36 }
 0x1d6   : > { %v1102_v37 = vpop.f32.mrf.mxu1 }
 0x1d7   : > { %v571_v47 = vmul.f32 %v1102_v37, %v563_v43 }
 0x1d8   : > { %v539_v38 = vpop.f32.mrf.mxu1 }
 0x1d9   : > { %v570_v49 = vmul.f32 %v562_v46, %v539_v38 }
 0x1da   : > { %v1105_v40 = vpop.f32.mrf.mxu1 }
 0x1db   : > { %v573_v42 = vmul.f32 %v1105_v40, %v565_v39 }
 0x1dc   : > { %v549_v44 = vpop.f32.mrf.mxu1 }
 0x1dd   : > { %v572_v45 = vmul.f32 %v564_v41, %v549_v44  ;;  %1106 = vmatprep.subr.mxu1 %v573_v42 }
 0x1de   : > { %1107 = vmatpush3.msra.mxu1 %v573_v42 }
 0x1df   : > { %1108 = vmatprep.subr.mxu1 %v572_v45 }
 0x1e0   : > { %1109 = vmatpush3.msra.mxu1 %v572_v45 }
 0x1e1   : > { %1110 = vmatprep.subr.mxu1 %v571_v47 }
 0x1e2   : > { %1111 = vmatpush3.msra.mxu1 %v571_v47 }
 0x1e3   : > { %1112 = vmatprep.subr.mxu1 %v570_v49 }
 0x1e4   : > { %1113 = vmatpush3.msra.mxu1 %v570_v49 }
 0x1e5   : > { %1114 = vmatprep.subr.mxu1 %v569_v51 }
 0x1e6   : > { %1115 = vmatpush3.msra.mxu1 %v569_v51 }
 0x1e7   : > { %1116 = vmatprep.subr.mxu1 %v568_v53 }
 0x1e8   : > { %1117 = vmatpush3.msra.mxu1 %v568_v53 }
 0x1e9   : > { %1118 = vmatprep.subr.mxu1 %v567_v55 }
 0x1ea   : > { %1119 = vmatpush3.msra.mxu1 %v567_v55 }
 0x1eb   : > { %1120 = vmatprep.subr.mxu1 %v566_v56 }
 0x1ec   : > { %1121 = vmatpush3.msra.mxu1 %v566_v56 }
 0x1ed   : > { %1123 = vmatmul.mubr.msk.f32.vlgmr.msra.gmra.mxu1 %vm296_vm0, %v575_v57  ;;  %1162 = vmatprep.subr.mxu1 %v1539_v27 }
 0x1ee   : > { %1125 = vmatprep.mubr.msk.f32.mxu1 %vm296_vm0, %v576_v58  ;;  %1170 = vmatpush3.msra.mxu1 %v1539_v27 }
 0x1ef   : > { %1163 = vmatprep.subr.mxu1 %v1541_v28 }
 0x1f0   : > { %1171 = vmatpush3.msra.mxu1 %v1541_v28 }
 0x1f1   : > { %1126 = vmatmul.mubr.msk.f32.gmra.mxu1 %vm296_vm0, %v577_v59  ;;  %1164 = vmatprep.subr.mxu1 %v1545_v29 }
 0x1f2   : > { %1128 = vmatprep.mubr.msk.f32.mxu1 %vm296_vm0, %v578_v60  ;;  %1172 = vmatpush3.msra.mxu1 %v1545_v29 }
 0x1f3   : > { %1165 = vmatprep.subr.mxu1 %v1549_v30 }
 0x1f4   : > { %1173 = vmatpush3.msra.mxu1 %v1549_v30 }
 0x1f5   : > { %1129 = vmatmul.mubr.msk.f32.gmra.mxu1 %vm296_vm0, %v579_v61  ;;  %1166 = vmatprep.subr.mxu1 %v1553_v31 }
 0x1f6   : > { %1131 = vmatprep.mubr.msk.f32.mxu1 %vm296_vm0, %v580_v62  ;;  %1174 = vmatpush3.msra.mxu1 %v1553_v31 }
 0x1f7   : > { %1167 = vmatprep.subr.mxu1 %v1557_v32 }
 0x1f8   : > { %1175 = vmatpush3.msra.mxu1 %v1557_v32 }
 0x1f9   : > { %1132 = vmatmul.mubr.msk.f32.gmra.mxu1 %vm296_vm0, %v581_v63  ;;  %1168 = vmatprep.subr.mxu1 %v712_v0 }
 0x1fa   : > { %1176 = vmatpush3.msra.mxu1 %v712_v0 }
 0x1fb   : > { %1169 = vmatprep.subr.mxu1 %v711_v1 }
 0x1fc   : > { %1177 = vmatpush3.msra.mxu1 %v711_v1 }
 0x2ad   : > { %v1124_v2 = vpop.f32.mrf.mxu1 }
 0x2af   : > { %v672_v3 = vpop.f32.mrf.mxu1 }
 0x2b0   : > { %1150 = vmatprep.mubr.msk.f32.mxu0 %vm296_vm0, %v672_v3 }
 0x2b1   : > { %v1127_v4 = vpop.f32.mrf.mxu1  ;;  %1151 = vmatmul.mubr.msk.f32.vlgmr.msra.gmra.mxu0 %vm296_vm0, %v1124_v2 }
 0x2b3   : > { %v682_v5 = vpop.f32.mrf.mxu1 }
 0x2b4   : > { %1153 = vmatprep.mubr.msk.f32.mxu0 %vm296_vm0, %v682_v5 }
 0x2b5   : > { %v1130_v6 = vpop.f32.mrf.mxu1  ;;  %1154 = vmatmul.mubr.msk.f32.gmra.mxu0 %vm296_vm0, %v1127_v4 }
 0x2b7   : > { %v692_v7 = vpop.f32.mrf.mxu1 }
 0x2b8   : > { %1156 = vmatprep.mubr.msk.f32.mxu0 %vm296_vm0, %v692_v7 }
 0x2b9   : > { %v1133_v8 = vpop.f32.mrf.mxu1  ;;  %1157 = vmatmul.mubr.msk.f32.gmra.mxu0 %vm296_vm0, %v1130_v6 }
 0x2bb   : > { %v702_v9 = vpop.f32.mrf.mxu1 }
 0x2bc   : > { %1159 = vmatprep.mubr.msk.f32.mxu1 %vm296_vm0, %v702_v9 }
 0x2bd   : > { %1160 = vmatmul.mubr.msk.f32.vlgmr.msra.gmra.mxu1 %vm296_vm0, %v1133_v8 }
 0x371   : > { %v1152_v10 = vpop.f32.mrf.mxu0 }
 0x372   : > { %849 = vst.msk [vmem:[%s274_s26 + $0x8] sm:$0xff] %vm296_vm0, %v1152_v10 }
 0x373   : > { %v809_v11 = vpop.f32.mrf.mxu0 }
 0x374   : > { %848 = vst.msk [vmem:[%s274_s26] sm:$0xff] %vm296_vm0, %v809_v11 }
 0x375   : > { %v1155_v12 = vpop.f32.mrf.mxu0 }
 0x376   : > { %851 = vst.msk [vmem:[%s274_s26 + $0x18] sm:$0xff] %vm296_vm0, %v1155_v12 }
 0x377   : > { %v819_v13 = vpop.f32.mrf.mxu0 }
 0x378   : > { %850 = vst.msk [vmem:[%s274_s26 + $0x10] sm:$0xff] %vm296_vm0, %v819_v13 }
 0x379   : > { %v1158_v14 = vpop.f32.mrf.mxu0 }
 0x37a   : > { %853 = vst.msk [vmem:[%s274_s26 + $0x28] sm:$0xff] %vm296_vm0, %v1158_v14 }
 0x37b   : > { %v829_v15 = vpop.f32.mrf.mxu0 }
 0x37c   : > { %852 = vst.msk [vmem:[%s274_s26 + $0x20] sm:$0xff] %vm296_vm0, %v829_v15 }
 0x37d   : > { %v1161_v16 = vpop.f32.mrf.mxu1 }
 0x37e   : > { %855 = vst.msk [vmem:[%s274_s26 + $0x38] sm:$0xff] %vm296_vm0, %v1161_v16 }
 0x37f   : > { %v839_v17 = vpop.f32.mrf.mxu1 }
 0x380   : > { %854 = vst.msk [vmem:[%s274_s26 + $0x30] sm:$0xff] %vm296_vm0, %v839_v17 }
 0x381   : > { %1307 = shalt.err (!%p1304_p3)
}
 0x382   : > { %s1308_s16 = scalar_lea.hbm %s1627_s9, 1024  ;;  %s1312_s19 = scalar_lea.hbm %s1677_s6, 2048 }
 0x383   : > { %p1309_p2 = scmp.ne.s32.totalorder %s1627_s9, %s1308_s16  ;;  %p1313_p7 = scmp.lt.s32.totalorder %s1627_s9, %s1677_s6 }
 0x384   : > { %p1314_p6 = scmp.lt.s32.totalorder %s1312_s19, %s1308_s16 }
 0x385   : > { %p1310_p4 = pnand %p1309_p2, %p1444_p5 }
 0x386   : > { %p1315_p9 = por %p1314_p6, %p1313_p7 }
 0x387   : > { %p1311_p13 = pneg %p1310_p4 }
 0x389   : > { %p1316_p10 = pnand %p1315_p9, %p1311_p13 }
 0x38b   : > { %1319 = shalt.err (!%p1316_p10)
}
 0x38c   : > { %s1369_s29 = smov 128   ;;  %s1370_s10 = smov 8  }
 0x38d   : > { %1186 = dma.vmem_to_hbm [thread:$0]  (%p1444_p5), %s1622_s28, 1024, %s1627_s9, %s1631_s25, %s1369_s29, %s1369_s29, %s1370_s10  }
 0x38e PF: > { %p1203_p12 = scmp.ge.s32.totalorder %s1362_s24, 2  ;;  %s885_s11 = sand.u32 1, %s1350_s21  }
 0x38f   : > { %p1687_p8 = scmp.ne.s32.totalorder %s1680_s8, 0  ;;  %s886_s12 = scalar_lea.sflag [#allocation4], %s885_s11 }
 0x391   : > { %p1196_p11 = pnand %p1203_p12, %p1687_p8 }
 0x393   : > { %p1197_p0 = pneg %p1196_p11 }
 0x395   : > { %1345 = dma.done.wait (%p1197_p0), %s886_s12, 1024  }
 0x396   : > { %1347 = vsyncadd (%p1197_p0), %s886_s12, 4294966272  ;;  %p18_p1 = scmp.ge.s32.totalorder %s1431_s27, 4   ;;  %s1688_s21 = smov %s1354_s22 }
 0x397   : > { %s1689_s22 = smov %s1358_s23  ;;  %s1690_s23 = smov %s1442_s30 }
 0x398   : > { %s1691_s24 = smov %s1431_s27  ;;  %20 = sbr.rel (!%p18_p1) target bundleno = 5 (0x5), region = 88 }
 0x39d   :  { %891 = vsyncpa [#allocation3], 1 }
 0x39e   :  { %893 = vsyncpa [#allocation3 + $0x1], 1 }
 0x39f   :  { %894 = vsyncpa [#allocation6], 1 }
 0x3a0   :  { %895 = vsyncpa [#allocation4], 1 }
 0x3a1   :  { %897 = vsyncpa [#allocation4 + $0x1], 1 }

</bundles_post_ra>
